<compile_context>
chip_gen: v7x
topology: tpu7x:2x2x1
jax: 0.10.0
libtpu: 0.0.40
codegen_flags: <defaults>
</compile_context>

<pallas_src>
import functools

import jax
import jax.numpy as jnp
from jax.experimental import pallas as pl
from jax.experimental.pallas import tpu as pltpu


_VMEM_LIMIT = 48 * 1024 * 1024   # safe on v5e/v6e (128 MiB phys) and v7x (64 MiB phys)


def _round_up(x, m):
    return ((x + m - 1) // m) * m


def _choose_row_tile(M, D, itemsize, target_bytes=2 * 1024 * 1024, max_rows=2048):
    """Row tile giving ~2 MiB blocks (near HBM roofline), multiple of 8 sublanes."""
    rows = target_bytes // max(D * itemsize, 1)
    rows = max(8, min(max_rows, (rows // 8) * 8))
    rows = min(rows, _round_up(M, 8))
    # Prefer >=2 row tiles so the "parallel" axis can feed both v7x TensorCores.
    if rows >= M and M > 8:
        rows = max(8, _round_up(-(-M // 2), 8))
    return rows


def _choose_f_tile(F):
    if F % 256 == 0:
        return min(F, 256)
    if F % 128 == 0:
        return min(F, 128)
    return F   # full-extent block is always legal


def _layernorm_rows(x, g, b, eps):
    # x: (TM, D) f32, g/b: (1, D) f32
    mu = jnp.mean(x, axis=-1, keepdims=True)
    xc = x - mu
    var = jnp.mean(xc * xc, axis=-1, keepdims=True)
    return xc * jax.lax.rsqrt(var + eps) * g + b


# ----------------------------------------------------------------------------
# Kernel 1: plain LayerNorm (the `norm` part of PreNorm), row-tiled.
# ----------------------------------------------------------------------------
def _layernorm_kernel(x_ref, g_ref, b_ref, o_ref, *, eps):
    x = x_ref[...].astype(jnp.float32)
    y = _layernorm_rows(x, g_ref[...], b_ref[...], eps)
    o_ref[...] = y.astype(o_ref.dtype)


def layernorm_pallas(x, gamma, beta, *, eps=1e-5, row_tile=None):
    """LayerNorm over the last axis of x (any leading shape)."""
    orig_shape = x.shape
    D = orig_shape[-1]
    x2 = x.reshape(-1, D)
    M = x2.shape[0]
    tm = row_tile or _choose_row_tile(M, D, x2.dtype.itemsize)

    g2 = gamma.reshape(1, D).astype(jnp.float32)
    b2 = beta.reshape(1, D).astype(jnp.float32)

    out = pl.pallas_call(
        functools.partial(_layernorm_kernel, eps=eps),
        out_shape=jax.ShapeDtypeStruct((M, D), x.dtype),
        grid=(pl.cdiv(M, tm),),
        in_specs=[
            pl.BlockSpec((tm, D), lambda i: (i, 0)),
            pl.BlockSpec((1, D), lambda i: (0, 0)),
            pl.BlockSpec((1, D), lambda i: (0, 0)),
        ],
        out_specs=pl.BlockSpec((tm, D), lambda i: (i, 0)),
        compiler_params=pltpu.CompilerParams(
            dimension_semantics=("parallel",),
            vmem_limit_bytes=_VMEM_LIMIT,
        ),
    )(x2, g2, b2)
    return out.reshape(orig_shape)


# ----------------------------------------------------------------------------
# Kernel 2: fused PreNorm fast path when `fn` begins with a Linear
#   (LayerNorm -> x @ W + b).  F is tiled; LN is computed once per row tile
#   into VMEM scratch and reused across F tiles; weight stays bf16.
# ----------------------------------------------------------------------------
def _prenorm_linear_kernel(x_ref, g_ref, b_ref, w_ref, wb_ref, o_ref, xn_ref, *, eps):
    @pl.when(pl.program_id(1) == 0)
    def _():
        x = x_ref[...].astype(jnp.float32)
        xn = _layernorm_rows(x, g_ref[...], b_ref[...], eps)
        xn_ref[...] = xn.astype(xn_ref.dtype)       # cache normalized rows (bf16)

    y = jnp.dot(xn_ref[...], w_ref[...], preferred_element_type=jnp.float32)
    y = y + wb_ref[...].astype(jnp.float32)
    o_ref[...] = y.astype(o_ref.dtype)


def prenorm_linear_pallas(x, gamma, beta, w, wb, *, eps=1e-5, row_tile=256, f_tile=None):
    """PreNorm with fn = Linear: LayerNorm(x) @ w + wb, fused in one kernel.

    w: (D, F) pre-transposed weight, wb: (F,) bias.  Weight runs on the MXU in
    bf16 with f32 accumulation.
    """
    orig_shape = x.shape
    D = orig_shape[-1]
    F = w.shape[-1]
    x2 = x.reshape(-1, D)
    M = x2.shape[0]

    tm = min(row_tile, _round_up(M, 8))
    if tm >= M and M > 8:                      # keep >=2 row tiles for megacore
        tm = max(8, _round_up(-(-M // 2), 8))
    tn = f_tile or _choose_f_tile(F)

    g2 = gamma.reshape(1, D).astype(jnp.float32)
    b2 = beta.reshape(1, D).astype(jnp.float32)
    wb2 = wb.reshape(1, F).astype(jnp.float32)
    w_lo = w.astype(jnp.bfloat16)              # MXU-native operand; f32 accumulate

    out = pl.pallas_call(
        functools.partial(_prenorm_linear_kernel, eps=eps),
        out_shape=jax.ShapeDtypeStruct((M, F), x.dtype),
        grid=(pl.cdiv(M, tm), pl.cdiv(F, tn)),
        in_specs=[
            pl.BlockSpec((tm, D), lambda i, j: (i, 0)),   # x: invariant across j
            pl.BlockSpec((1, D), lambda i, j: (0, 0)),    # gamma
            pl.BlockSpec((1, D), lambda i, j: (0, 0)),    # beta
            pl.BlockSpec((D, tn), lambda i, j: (0, j)),   # weight: F-tiled
            pl.BlockSpec((1, tn), lambda i, j: (0, j)),   # bias:   F-tiled
        ],
        out_specs=pl.BlockSpec((tm, tn), lambda i, j: (i, j)),
        scratch_shapes=[pltpu.VMEM((tm, D), jnp.bfloat16)],
        compiler_params=pltpu.CompilerParams(
            dimension_semantics=("parallel", "arbitrary"),
            vmem_limit_bytes=_VMEM_LIMIT,
        ),
    )(x2, g2, b2, w_lo, wb2)

    return out.reshape(orig_shape[:-1] + (F,))


# ----------------------------------------------------------------------------
# PreNorm: faithful forward of the PyTorch module.
# ----------------------------------------------------------------------------
def pre_norm(x, gamma, beta, fn, *, eps=1e-5, **kwargs):
    """return fn(LayerNorm(x), **kwargs) — `fn` is an arbitrary JAX callable."""
    # TODO(synk): an arbitrary `fn` sub-module cannot be lowered into the kernel
    # generically; only the LayerNorm runs in Pallas here.  Use
    # prenorm_linear_pallas when `fn` begins with a Linear (to_qkv / MLP fc1).
    return fn(layernorm_pallas(x, gamma, beta, eps=eps), **kwargs)


# ----------------------------------------------------------------------------
# Reference (pure JAX) for correctness checking.
# ----------------------------------------------------------------------------
def _layernorm_ref(x, gamma, beta, eps=1e-5):
    mu = jnp.mean(x, axis=-1, keepdims=True)
    var = jnp.mean((x - mu) ** 2, axis=-1, keepdims=True)
    return (x - mu) * jax.lax.rsqrt(var + eps) * gamma + beta


if __name__ == "__main__":
    key = jax.random.PRNGKey(0)

    # Small shapes consistent with the module: x is (batch, tokens, dim).
    B, N, D = 2, 16, 128          # lane-dense feature dim (ViT-like)
    F = 256                       # output dim of fn's Linear

    kx, kg, kb, kw, kwb = jax.random.split(key, 5)
    x = jax.random.normal(kx, (B, N, D), jnp.float32)
    gamma = 1.0 + 0.1 * jax.random.normal(kg, (D,), jnp.float32)
    beta = 0.1 * jax.random.normal(kb, (D,), jnp.float32)
    w = 0.05 * jax.random.normal(kw, (D, F), jnp.float32)
    wb = 0.05 * jax.random.normal(kwb, (F,), jnp.float32)

    # Generic PreNorm path: Pallas LayerNorm (f32), then arbitrary fn (a Linear).
    fn = lambda y: jnp.dot(y, w, preferred_element_type=jnp.float32) + wb
    out_generic = jax.block_until_ready(pre_norm(x, gamma, beta, fn))

    # Fused fast path: LayerNorm + bf16 Linear in one kernel.
    out_fused = jax.block_until_ready(prenorm_linear_pallas(x, gamma, beta, w, wb))

    # Reference.
    ln_ref = _layernorm_ref(x, gamma, beta)
    ref = fn(ln_ref)

    assert out_generic.shape == (B, N, F)
    assert out_fused.shape == (B, N, F)
    assert jnp.all(jnp.isfinite(out_generic)) and jnp.all(jnp.isfinite(out_fused))
    assert jnp.max(jnp.abs(out_generic - ref)) < 1e-4
    # bf16 matmul operands -> relaxed tolerance vs. the f32 reference.
    assert jnp.max(jnp.abs(out_fused - ref)) < 5e-2

    # Ragged row count (M not a multiple of the tile / of 8) — exercises the
    # no-pad / no-slice path on both kernels.
    xr = jax.random.normal(kx, (B, 13, D), jnp.float32)
    ln_r = jax.block_until_ready(layernorm_pallas(xr, gamma, beta))
    assert jnp.max(jnp.abs(ln_r - _layernorm_ref(xr, gamma, beta))) < 1e-4
    fused_r = jax.block_until_ready(prenorm_linear_pallas(xr, gamma, beta, w, wb))
    ref_r = jnp.dot(_layernorm_ref(xr, gamma, beta), w) + wb
    assert jnp.all(jnp.isfinite(fused_r))
    assert jnp.max(jnp.abs(fused_r - ref_r)) < 5e-2

    # Non-128-aligned feature dim (full-D block is still legal).
    D2 = 32
    x2 = jax.random.normal(kx, (B, 8, D2), jnp.float32)
    g2 = jnp.ones((D2,), jnp.float32)
    b2 = jnp.zeros((D2,), jnp.float32)
    ln2 = jax.block_until_ready(layernorm_pallas(x2, g2, b2))
    assert jnp.max(jnp.abs(ln2 - _layernorm_ref(x2, g2, b2))) < 1e-4

    print("KERNEL_OK")
</pallas_src>

<mosaic_0001>
module attributes {stable_mosaic.version = 11 : i64} {
  func.func @_layernorm_kernel(%arg0: i32, %arg1: memref<16x128xf32, #tpu.memory_space<vmem>>, %arg2: memref<1x128xf32, #tpu.memory_space<vmem>>, %arg3: memref<1x128xf32, #tpu.memory_space<vmem>>, %arg4: memref<16x128xf32, #tpu.memory_space<vmem>>) attributes {dimension_semantics = [#tpu.dimension_semantics<parallel>], iteration_bounds = array<i64: 2>, scalar_prefetch = 0 : i64, scratch_operands = 0 : i64, tpu.core_type = #tpu.core_type<tc>, window_params = [{transform_indices = @transform_0, window_bounds = array<i64: 16, 128>}, {pipeline_mode = #tpu.pipeline_mode<synchronous>, transform_indices = @transform_1, window_bounds = array<i64: 1, 128>}, {pipeline_mode = #tpu.pipeline_mode<synchronous>, transform_indices = @transform_2, window_bounds = array<i64: 1, 128>}, {transform_indices = @transform_3, window_bounds = array<i64: 16, 128>}]} {
    %c0 = arith.constant 0 : index
    %c0_0 = arith.constant 0 : index
    %0 = vector.load %arg1[%c0, %c0_0] : memref<16x128xf32, #tpu.memory_space<vmem>>, vector<16x128xf32>
    %c0_1 = arith.constant 0 : index
    %c0_2 = arith.constant 0 : index
    %1 = vector.load %arg2[%c0_1, %c0_2] : memref<1x128xf32, #tpu.memory_space<vmem>>, vector<1x128xf32>
    %c0_3 = arith.constant 0 : index
    %c0_4 = arith.constant 0 : index
    %2 = vector.load %arg3[%c0_3, %c0_4] : memref<1x128xf32, #tpu.memory_space<vmem>>, vector<1x128xf32>
    %cst = arith.constant dense<0.000000e+00> : vector<16xf32>
    %3 = vector.multi_reduction <add>, %0, %cst [1] : vector<16x128xf32> to vector<16xf32>
    %4 = vector.shape_cast %3 : vector<16xf32> to vector<16x1xf32>
    %cst_5 = arith.constant 1.280000e+02 : f32
    %5 = vector.broadcast %cst_5 : f32 to vector<16x1xf32>
    %6 = arith.divf %4, %5 : vector<16x1xf32>
    %7 = vector.broadcast %6 : vector<16x1xf32> to vector<16x128xf32>
    %8 = arith.subf %0, %7 : vector<16x128xf32>
    %9 = arith.mulf %8, %8 : vector<16x128xf32>
    %cst_6 = arith.constant dense<0.000000e+00> : vector<16xf32>
    %10 = vector.multi_reduction <add>, %9, %cst_6 [1] : vector<16x128xf32> to vector<16xf32>
    %11 = vector.shape_cast %10 : vector<16xf32> to vector<16x1xf32>
    %cst_7 = arith.constant 1.280000e+02 : f32
    %12 = vector.broadcast %cst_7 : f32 to vector<16x1xf32>
    %13 = arith.divf %11, %12 : vector<16x1xf32>
    %cst_8 = arith.constant 9.99999974E-6 : f32
    %14 = vector.broadcast %cst_8 : f32 to vector<16x1xf32>
    %15 = arith.addf %13, %14 : vector<16x1xf32>
    %16 = math.rsqrt %15 : vector<16x1xf32>
    %17 = vector.broadcast %16 : vector<16x1xf32> to vector<16x128xf32>
    %18 = arith.mulf %8, %17 : vector<16x128xf32>
    %19 = vector.broadcast %1 : vector<1x128xf32> to vector<16x128xf32>
    %20 = arith.mulf %18, %19 : vector<16x128xf32>
    %21 = vector.broadcast %2 : vector<1x128xf32> to vector<16x128xf32>
    %22 = arith.addf %20, %21 : vector<16x128xf32>
    %c0_9 = arith.constant 0 : index
    %c0_10 = arith.constant 0 : index
    %23 = vector.load %arg4[%c0_9, %c0_10] : memref<16x128xf32, #tpu.memory_space<vmem>>, vector<16x128xf32>
    tpu.vector_store %arg4[%c0_9, %c0_10], %22 {strides = array<i32>} : memref<16x128xf32, #tpu.memory_space<vmem>>, vector<16x128xf32>,
    return
  }
  func.func @transform_0(%arg0: i32) -> (i32, i32) {
    %c0_i32 = arith.constant 0 : i32
    %c0_i32_0 = arith.constant 0 : i32
    return %arg0, %c0_i32 : i32, i32
  }
  func.func @transform_1(%arg0: i32) -> (i32, i32) {
    %c0_i32 = arith.constant 0 : i32
    %c0_i32_0 = arith.constant 0 : i32
    %c0_i32_1 = arith.constant 0 : i32
    return %c0_i32, %c0_i32_0 : i32, i32
  }
  func.func @transform_2(%arg0: i32) -> (i32, i32) {
    %c0_i32 = arith.constant 0 : i32
    %c0_i32_0 = arith.constant 0 : i32
    %c0_i32_1 = arith.constant 0 : i32
    return %c0_i32, %c0_i32_0 : i32, i32
  }
  func.func @transform_3(%arg0: i32) -> (i32, i32) {
    %c0_i32 = arith.constant 0 : i32
    %c0_i32_0 = arith.constant 0 : i32
    return %arg0, %c0_i32 : i32, i32
  }
}

</mosaic_0001>

<bundles_post_ra>
// kernel: tpu_custom_call.1
= control target key start
LH: loop header
LB: loop body
LE: loop exit
PB: predicated region body
PF: predicated region fallthrough
CT: control target
= control target key end

     0   :  { %8 = vsyncpa [#allocation3], 0  ;;  %s691_s0 = inlined_call_operand.hbm [shape: f32[32,128], index: 0, kind: input, shape index: {}]   ;;  %s692_s1 = inlined_call_operand.vmem [shape: f32[1,128], index: 1, kind: input, shape index: {}]   ;;  %s693_s2 = inlined_call_operand.vmem [shape: f32[1,128], index: 2, kind: input, shape index: {}]   ;;  %s694_s3 = inlined_call_operand.hbm [shape: f32[32,128], index: 3, kind: output, shape index: {}]  }
   0x1   :  { %10 = vsyncpa [#allocation3 + $0x1], 0 }
   0x2   :  { %11 = vsyncpa [#allocation4], 0 }
   0x3   :  { %13 = vsyncpa [#allocation4 + $0x1], 0  ;;  %s519_s12 = smov 0   ;;  %s521_s13 = smov 0  }
   0x4   :  { %s523_s14 = smov 0   ;;  %s525_s15 = smov 0  }
   0x5 LB: > { %s540_s16 = sadd.s32 4294967295, %s491_s15   ;;  %s323_s17 = sadd.s32 4294967294, %s491_s15   ;;  %s491_s15 = sphi %s525_s15, %s707_s15   ;;  %s487_s14 = sphi %s523_s14, %s706_s14   ;;  %s483_s13 = sphi %s521_s13, %s705_s13   ;;  %s479_s12 = sphi %s519_s12, %s704_s12  }
   0x6   : > { %s544_s18 = sadd.s32 1, %s491_s15   ;;  %s26_s19 = sadd.s32 1, %s487_s14 }
   0x7   : > { %s23_s20 = ssub.s32 %s491_s15, %s544_s18  ;;  %p33_p0 = scmp.ne.s32.totalorder %s487_s14, %s483_s13 }
   0x8   : > { %p24_p1 = scmp.eq.s32.totalorder %s23_s20, 0  ;;  %p34_p2 = scmp.eq.s32.totalorder %s491_s15, 0 }
   0x9   : > { %p39_p3 = scmp.ne.s32.totalorder %s483_s13, %s479_s12  ;;  %p40_p4 = scmp.eq.s32.totalorder %s540_s16, 0 }
   0xa   : > { %s556_s21 = scalar_select %p24_p1, %s487_s14, %s26_s19  }
   0xb   : > { %p558_p5 = por %p34_p2, %p33_p0  ;;  %p562_p6 = por %p40_p4, %p39_p3 }
   0xc   : > { %p105_p7 = scmp.eq.s32.totalorder %s540_s16, 1  ;;  %p111_p8 = scmp.eq.s32.totalorder %s323_s17, 1 }
   0xd   : > { %p353_p10 = scmp.lt.s32.totalorder %s491_s15, 2  ;;  %s137_s26 = sand.u32 1, %s487_s14  }
   0xe   : > { %p569_p11 = por %p105_p7, %p33_p0  ;;  %p573_p12 = por %p111_p8, %p39_p3 }
   0xf   : > { %s339_s27 = sshll.u32 %s491_s15, 8  ;;  %s326_s28 = sshll.u32 %s137_s26, 4 }
  0x10   : > { %s698_s24 = scalar_select %p569_p11, 1, 0 }
  0x11   : > { %s699_s25 = scalar_select %p573_p12, 1, 0 }
  0x12   : > { %s582_s4 = scalar_lea.hbm %s691_s0, %s339_s27  ;;  %s141_s5 = scalar_lea.vmem [#allocation2], %s326_s28 }
  0x13   : > { %s148_s6 = sshll.u32 %s141_s5, 4  ;;  %p586_p13 = pnand %p353_p10, %p558_p5  ;;  %s590_s6 = int_to_ptr.vmem [resolvable:$true] %s148_s6 }
  0x14   : > { %s592_s8 = scalar_lea.sflag [#allocation3], %s137_s26  ;;  %s395_s9 = scalar_lea.hbm %s582_s4, 256 }
  0x15   : > { %p396_p0 = scmp.ne.s32.totalorder %s582_s4, %s395_s9  ;;  %p397_p1 = pneg %p586_p13 }
  0x16   : > { %s400_s17 = scalar_lea.hbm %s691_s0, 512  ;;  %p401_p4 = scmp.lt.u32.totalorder %s582_s4, %s691_s0 }
  0x17   : > { %p398_p2 = pnand %p397_p1, %p396_p0  ;;  %p402_p5 = scmp.lt.u32.totalorder %s400_s17, %s395_s9 }
  0x18   : > { %p404_p8 = scmp.lt.u32.totalorder %s395_s9, %s582_s4 }
  0x19   : > { %p399_p3 = pneg %p398_p2  ;;  %p403_p7 = por %p402_p5, %p401_p4 }
  0x1b   : > { %p405_p10 = por %p404_p8, %p403_p7 }
  0x1d   : > { %p406_p9 = pnand %p405_p10, %p399_p3 }
  0x1f   : > { %409 = shalt.err (!%p406_p9)
}
  0x20   : > { %s410_s22 = scalar_lea.vmem %s590_s6, 256  ;;  %s493_s26 = smov [#allocation2]  }
  0x21   : > { %p411_p0 = scmp.ne.s32.totalorder %s590_s6, %s410_s22  ;;  %s415_s27 = sshll.u32 %s493_s26, 4  ;;  %s416_s27 = int_to_ptr.vmem [resolvable:$false] %s415_s27 }
  0x22   : > { %s417_s28 = scalar_lea.vmem %s416_s27, 512  ;;  %p418_p11 = scmp.lt.s32.totalorder %s590_s6, %s416_s27 }
  0x23   : > { %p413_p2 = pnand %p411_p0, %p397_p1  ;;  %p419_p4 = scmp.lt.s32.totalorder %s417_s28, %s410_s22 }
  0x25   : > { %p414_p12 = pneg %p413_p2  ;;  %p420_p5 = por %p419_p4, %p418_p11 }
  0x27   : > { %p421_p7 = pnand %p420_p5, %p414_p12 }
  0x29   : > { %424 = shalt.err (!%p421_p7)
}
  0x2a   : > { %s494_s29 = smov 128   ;;  %s495_s30 = smov 8  }
  0x2b   : > { %348 = dma.hbm_to_vmem [thread:$0]  (!%p586_p13), %s582_s4, 256, %s590_s6, %s592_s8, %s494_s29, %s494_s29, %s495_s30  }
  0x2c   : > { %p329_p9 = scmp.ge.s32.totalorder %s491_s15, 1  ;;  %p156_p1 = scmp.lt.s32.totalorder %s491_s15, 3 }
  0x2e   : > { %p157_p3 = pnand %p329_p9, %p156_p1 }
  0x2f   : > { %s623_s5 = sand.u32 (!%p157_p3), 1, %s483_s13  }
  0x30   : > { %160 = sbr.rel (%p157_p3) target bundleno = 387 (0x183), region = 32  ;;  %s330_s9 = sshll.u32 (!%p157_p3), %s623_s5, 4 }
  0x31   : > { %s163_s10 = scalar_lea.sflag (!%p157_p3), [#allocation3], %s623_s5  ;;  %s166_s11 = scalar_lea.vmem (!%p157_p3), [#allocation2], %s330_s9 }
  0x37   : > { %470 = dma.done.wait (%p562_p6), %s163_s10, 256  }
  0x38   : > { %472 = vsyncadd (%p562_p6), %s163_s10, 4294967040  ;;  %v191_v0 = vld [vmem:[%s166_s11] sm:$0xff]  ;;  %v192_v1 = vld [vmem:[%s166_s11 + $0x8] sm:$0xff]  ;;  %s340_s8 = sshll.u32 %s540_s16, 8  ;;  %s188_s17 = scalar_lea.vmem [#allocation5], %s330_s9 }
  0x39   : > { %195 = vadd.xlane.f32.xlu0 %v191_v0  ;;  %v332_v17 = vld [vmem:[%s692_s1] ss:$0 sm:$0xff]  ;;  %s250_s19 = sshll.u32 %s188_s17, 4  ;;  %s645_s26 = scalar_lea.hbm %s694_s3, %s340_s8  ;;  %s647_s19 = int_to_ptr.vmem [resolvable:$true] %s250_s19 }
  0x3a   : > { %v333_v19 = vld [vmem:[%s693_s2] ss:$0 sm:$0xff]  ;;  %s237_s27 = scalar_lea.sflag [#allocation4], %s623_s5  ;;  %s425_s28 = scalar_lea.vmem %s647_s19, 256 }
  0x3b   : > { %p426_p6 = scmp.ne.s32.totalorder %s647_s19, %s425_s28  ;;  %p701_p11 = scmp.ne.s32.totalorder %s698_s24, 0 }
  0x3c   : > { %s496_s16 = smov [#allocation5]  }
  0x3d   : > { %197 = vadd.xlane.f32.xlu0 %v192_v1  ;;  %p427_p12 = pnand %p426_p6, %p701_p11  ;;  %s429_s29 = sshll.u32 %s496_s16, 4  ;;  %s430_s29 = int_to_ptr.vmem [resolvable:$false] %s429_s29 }
  0x3e   : > { %s431_s30 = scalar_lea.vmem %s430_s29, 512  ;;  %p432_p8 = scmp.lt.s32.totalorder %s647_s19, %s430_s29 }
  0x3f   : > { %p428_p13 = pneg %p427_p12  ;;  %p433_p10 = scmp.lt.s32.totalorder %s431_s30, %s425_s28 }
  0x41   : > { %p434_p0 = por %p433_p10, %p432_p8 }
  0x43   : > { %p435_p2 = pnand %p434_p0, %p428_p13 }
  0xc6   : > { %v196_v2 = vpop.xlane.xlu0 %195 }
  0xc7   : > { %v200_v3 = vmul.f32 0.0078125, %v196_v2 }
  0xc9   : > { %v202_v4 = vsub.f32 %v191_v0, %v200_v3 }
  0xca   : > { %v198_v5 = vpop.xlane.xlu0 %197 }
  0xcb   : > { %v201_v6 = vmul.f32 0.0078125, %v198_v5  ;;  %v204_v7 = vmul.f32 %v202_v4, %v202_v4 }
  0xcd   : > { %v203_v8 = vsub.f32 %v192_v1, %v201_v6  ;;  %206 = vadd.xlane.f32.xlu1 %v204_v7 }
  0xcf   : > { %v205_v9 = vmul.f32 %v203_v8, %v203_v8 }
  0xd1   : > { %208 = vadd.xlane.f32.xlu1 %v205_v9 }
 0x15a   : > { %v207_v10 = vpop.xlane.xlu1 %206 }
 0x15b   : > { %v210_v11 = vmul.f32 0.0078125, %v207_v10 }
 0x15d   : > { %v212_v12 = vadd.f32 1e-05, %v210_v11 }
 0x15e   : > { %v209_v13 = vpop.xlane.xlu1 %208 }
 0x15f   : > { %391 = vrsqrt.f32 %v212_v12  ;;  %v211_v14 = vmul.f32 0.0078125, %v209_v13 }
 0x161   : > { %v213_v15 = vadd.f32 1e-05, %v211_v14 }
 0x163   : > { %393 = vrsqrt.f32 %v213_v15 }
 0x169   : > { %v392_v16 = vpop.eup %391 }
 0x16a   : > { %v216_v18 = vmul.f32 %v392_v16, %v202_v4 }
 0x16c   : > { %v224_v20 = vmul.f32 %v332_v17, %v216_v18 }
 0x16d   : > { %v394_v21 = vpop.eup %393 }
 0x16e   : > { %v232_v22 = vadd.f32 %v333_v19, %v224_v20  ;;  %v217_v23 = vmul.f32 %v394_v21, %v203_v8 }
 0x170   : > { %v225_v24 = vmul.f32 %v332_v17, %v217_v23  ;;  %234 = vst [vmem:[%s188_s17] sm:$0xff] %v232_v22 }
 0x172   : > { %v233_v25 = vadd.f32 %v333_v19, %v225_v24 }
 0x174   : > { %235 = vst [vmem:[%s188_s17 + $0x8] sm:$0xff] %v233_v25 }
 0x175   : > { %438 = shalt.err (!%p435_p2)
}
 0x176   : > { %s439_s9 = scalar_lea.hbm %s645_s26, 256  ;;  %s443_s23 = scalar_lea.hbm %s694_s3, 512 }
 0x177   : > { %p440_p4 = scmp.ne.s32.totalorder %s645_s26, %s439_s9  ;;  %p444_p9 = scmp.lt.u32.totalorder %s645_s26, %s694_s3 }
 0x178   : > { %p445_p1 = scmp.lt.u32.totalorder %s443_s23, %s439_s9  ;;  %p447_p6 = scmp.lt.u32.totalorder %s439_s9, %s645_s26 }
 0x179   : > { %p441_p5 = pnand %p440_p4, %p701_p11 }
 0x17a   : > { %p446_p3 = por %p445_p1, %p444_p9 }
 0x17b   : > { %p442_p7 = pneg %p441_p5 }
 0x17c   : > { %p448_p12 = por %p447_p6, %p446_p3 }
 0x17e   : > { %p449_p13 = pnand %p448_p12, %p442_p7 }
 0x180   : > { %452 = shalt.err (!%p449_p13)
}
 0x181   : > { %s497_s7 = smov 128   ;;  %s498_s8 = smov 8  }
 0x182   : > { %343 = dma.vmem_to_hbm [thread:$0]  (%p701_p11), %s647_s19, 256, %s645_s26, %s237_s27, %s497_s7, %s497_s7, %s498_s8  }
 0x183 PF: > { %s265_s17 = sand.u32 1, %s479_s12   ;;  %p702_p8 = scmp.ne.s32.totalorder %s699_s25, 0 }
 0x184   : > { %p703_p10 = scmp.ge.s32.totalorder %s491_s15, 2  ;;  %s266_s20 = scalar_lea.sflag [#allocation4], %s265_s17 }
 0x186   : > { %p350_p0 = pnand %p703_p10, %p702_p8 }
 0x188   : > { %474 = dma.done.wait (!%p350_p0), %s266_s20, 256  }
 0x189   : > { %476 = vsyncadd (!%p350_p0), %s266_s20, 4294967040  ;;  %p16_p2 = scmp.ge.s32.totalorder %s544_s18, 4   ;;  %s704_s12 = smov %s483_s13 }
 0x18a   : > { %s705_s13 = smov %s487_s14  ;;  %s706_s14 = smov %s556_s21 }
 0x18b   : > { %s707_s15 = smov %s544_s18  ;;  %18 = sbr.rel (!%p16_p2) target bundleno = 5 (0x5), region = 77 }
 0x192   :  { %271 = vsyncpa [#allocation3], 1 }
 0x193   :  { %273 = vsyncpa [#allocation3 + $0x1], 1 }
 0x194   :  { %274 = vsyncpa [#allocation4], 1 }
 0x195   :  { %276 = vsyncpa [#allocation4 + $0x1], 1 }

</bundles_post_ra>
